<compile_context>
chip_gen: v7x
topology: tpu7x:2x2x1
jax: 0.10.0
libtpu: 0.0.40
codegen_flags: <defaults>
</compile_context>

<pallas_src>
import jax
import jax.numpy as jnp
from jax import lax
from jax.experimental import pallas as pl
from jax.experimental.pallas import tpu as pltpu


def simple_lstm_kernel(tok_ref, gx_ref, whh_ref, wout_ref, bout_ref, out_ref):
    T = tok_ref.shape[0]
    H = whh_ref.shape[0]                       # W_hh^T is (H, 4H)

    # ---- Hoisted weight / bias loads: issued once, not once per unrolled step.
    whh = whh_ref[...]                         # (H, 4H) bf16  (MXU operand)
    wout = wout_ref[...]                       # (H, C)  f32
    bout = bout_ref[...]                       # (1, C)  f32

    # ---- Hoisted, data-dependent gathers of the precomputed input projections.
    #      Each row is exactly one lane-dense (1, 128) vreg row; the addresses
    #      depend only on the token ids (SMEM scalars), never on h, so all T
    #      loads sit off the serial recurrence chain.
    gx_rows = [gx_ref[pl.ds(tok_ref[t], 1), :] for t in range(T)]

    # ---- Recurrence, fully unrolled (T is a small compile-time constant).
    #      Only h @ W_hh^T (bf16 MXU) + the gate nonlinearity are serial.
    h = jnp.zeros((1, H), jnp.float32)
    c = jnp.zeros((1, H), jnp.float32)
    for t in range(T):
        gates = gx_rows[t] + jnp.dot(h.astype(jnp.bfloat16), whh,
                                     preferred_element_type=jnp.float32)
        s = jax.nn.sigmoid(gates)              # one full-width EUP pass (i, f, o)
        u = jnp.tanh(gates)                    # one full-width EUP pass (g)
        i = s[:, 0 * H:1 * H]
        f = s[:, 1 * H:2 * H]
        g = u[:, 2 * H:3 * H]
        o = s[:, 3 * H:4 * H]
        c = f * c + i * g                      # f32 cell state throughout
        h = o * jnp.tanh(c)

    # ---- Fused fct1 ∘ fct2 (exact: no activation between them).
    out_ref[...] = jnp.dot(h, wout, preferred_element_type=jnp.float32) + bout


def simple_lstm_forward(tokens, params):
    emb, wih, whh, b_ih, b_hh, w1, b1, w2, b2 = params
    V, E = emb.shape
    H = whh.shape[1]                           # weight_hh is (4H, H)
    C = w2.shape[0]                            # fct2 weight is (C, 12)
    T = int(tokens.shape[0])

    # Parameter glue (one-time, outside the kernel).
    # Constant-fold the embedding through the input projection:
    #   gx_table[v] = emb[v] @ W_ih^T + (b_ih + b_hh)   -> (V, 4H), lane-dense rows.
    gx_table = (emb @ wih.T + (b_ih + b_hh)).astype(jnp.float32)    # (V, 4H)
    whh_bf16 = whh.T.astype(jnp.bfloat16)                           # (H, 4H)

    # Exact fusion of the two output Linears:
    #   y = (h @ W1^T + b1) @ W2^T + b2 = h @ (W1^T @ W2^T) + (b1 @ W2^T + b2)
    w_out = (w1.T @ w2.T).astype(jnp.float32)                       # (H, C)
    b_out = (b1 @ w2.T + b2).reshape(1, C).astype(jnp.float32)      # (1, C)

    # Guard the data-dependent VMEM gather against out-of-range token ids
    # (no hardware bounds check on in-kernel VMEM reads).
    tok = jnp.clip(tokens.astype(jnp.int32), 0, V - 1)

    vmem = pl.BlockSpec(memory_space=pltpu.MemorySpace.VMEM)
    smem = pl.BlockSpec(memory_space=pltpu.MemorySpace.SMEM)

    out = pl.pallas_call(
        simple_lstm_kernel,
        out_shape=jax.ShapeDtypeStruct((1, C), jnp.float32),
        in_specs=[smem, vmem, vmem, vmem, vmem],
        out_specs=vmem,
    )(tok, gx_table, whh_bf16, w_out, b_out)

    # PyTorch: h_n has shape (1, 1, H) -> result of the two Linears is (1, 1, C).
    return out.reshape(1, 1, C)


def reference_forward(tokens, params):
    """Pure-JAX f32 reference reproducing the PyTorch forward (unfused)."""
    emb, wih, whh, b_ih, b_hh, w1, b1, w2, b2 = params
    H = whh.shape[1]
    x = emb[tokens]                            # (T, E)

    def cell(carry, x_t):
        h, c = carry
        gates = x_t @ wih.T + b_ih + h @ whh.T + b_hh
        i = jax.nn.sigmoid(gates[0 * H:1 * H])
        f = jax.nn.sigmoid(gates[1 * H:2 * H])
        g = jnp.tanh(gates[2 * H:3 * H])
        o = jax.nn.sigmoid(gates[3 * H:4 * H])
        c_new = f * c + i * g
        h_new = o * jnp.tanh(c_new)
        return (h_new, c_new), None

    (h, _), _ = lax.scan(cell, (jnp.zeros(H), jnp.zeros(H)), x)
    h = h.reshape(1, 1, H)                     # h_n: (num_layers=1, batch=1, H)
    y = h @ w1.T + b1
    y = y @ w2.T + b2
    return y


if __name__ == "__main__":
    vocab_size = 50
    embedding_dim = 32      # hidden size == embedding_dim in this module
    context_size = 16
    seq_len = 8

    key = jax.random.PRNGKey(0)
    ks = jax.random.split(key, 10)
    H = embedding_dim
    scale = 0.1
    params = (
        jax.random.normal(ks[0], (vocab_size, embedding_dim), jnp.float32) * scale,  # embed
        jax.random.normal(ks[1], (4 * H, embedding_dim), jnp.float32) * scale,       # weight_ih_l0
        jax.random.normal(ks[2], (4 * H, H), jnp.float32) * scale,                   # weight_hh_l0
        jax.random.normal(ks[3], (4 * H,), jnp.float32) * scale,                     # bias_ih_l0
        jax.random.normal(ks[4], (4 * H,), jnp.float32) * scale,                     # bias_hh_l0
        jax.random.normal(ks[5], (12, H), jnp.float32) * scale,                      # fct1.weight
        jax.random.normal(ks[6], (12,), jnp.float32) * scale,                        # fct1.bias
        jax.random.normal(ks[7], (context_size, 12), jnp.float32) * scale,           # fct2.weight
        jax.random.normal(ks[8], (context_size,), jnp.float32) * scale,              # fct2.bias
    )

    tokens = jax.random.randint(ks[9], (seq_len,), 0, vocab_size, dtype=jnp.int32)

    out = simple_lstm_forward(tokens, params)
    out = jax.block_until_ready(out)

    ref = reference_forward(tokens, params)
    assert out.shape == (1, 1, context_size), out.shape
    # Tolerance loosened vs. the pure-f32 version: the recurrent h @ W_hh^T term
    # now uses bf16 MXU operands (f32 accumulation), compounded over T steps.
    assert jnp.allclose(out, ref, atol=1e-2, rtol=1e-2), (out, ref)

    print("KERNEL_OK")
</pallas_src>

<mosaic_0001>
module attributes {stable_mosaic.version = 11 : i64} {
  func.func @simple_lstm_kernel(%arg0: memref<8xi32, #tpu.memory_space<smem>>, %arg1: memref<50x128xf32, #tpu.memory_space<vmem>>, %arg2: memref<32x128xbf16, #tpu.memory_space<vmem>>, %arg3: memref<32x16xf32, #tpu.memory_space<vmem>>, %arg4: memref<1x16xf32, #tpu.memory_space<vmem>>, %arg5: memref<1x16xf32, #tpu.memory_space<vmem>>) attributes {dimension_semantics = [], scalar_prefetch = 0 : i64, scratch_operands = 0 : i64, tpu.core_type = #tpu.core_type<tc>} {
    %c0 = arith.constant 0 : index
    %c0_0 = arith.constant 0 : index
    %0 = vector.load %arg2[%c0, %c0_0] : memref<32x128xbf16, #tpu.memory_space<vmem>>, vector<32x128xbf16>
    %c0_1 = arith.constant 0 : index
    %c0_2 = arith.constant 0 : index
    %1 = vector.load %arg3[%c0_1, %c0_2] : memref<32x16xf32, #tpu.memory_space<vmem>>, vector<32x16xf32>
    %c0_3 = arith.constant 0 : index
    %c0_4 = arith.constant 0 : index
    %2 = vector.load %arg4[%c0_3, %c0_4] : memref<1x16xf32, #tpu.memory_space<vmem>>, vector<1x16xf32>
    %c0_5 = arith.constant 0 : index
    %3 = memref.load %arg0[%c0_5] : memref<8xi32, #tpu.memory_space<smem>>
    %4 = arith.index_cast %3 : i32 to index
    %c0_6 = arith.constant 0 : index
    %5 = vector.load %arg1[%4, %c0_6] : memref<50x128xf32, #tpu.memory_space<vmem>>, vector<1x128xf32>
    %c1 = arith.constant 1 : index
    %6 = memref.load %arg0[%c1] : memref<8xi32, #tpu.memory_space<smem>>
    %7 = arith.index_cast %6 : i32 to index
    %c0_7 = arith.constant 0 : index
    %8 = vector.load %arg1[%7, %c0_7] : memref<50x128xf32, #tpu.memory_space<vmem>>, vector<1x128xf32>
    %c2 = arith.constant 2 : index
    %9 = memref.load %arg0[%c2] : memref<8xi32, #tpu.memory_space<smem>>
    %10 = arith.index_cast %9 : i32 to index
    %c0_8 = arith.constant 0 : index
    %11 = vector.load %arg1[%10, %c0_8] : memref<50x128xf32, #tpu.memory_space<vmem>>, vector<1x128xf32>
    %c3 = arith.constant 3 : index
    %12 = memref.load %arg0[%c3] : memref<8xi32, #tpu.memory_space<smem>>
    %13 = arith.index_cast %12 : i32 to index
    %c0_9 = arith.constant 0 : index
    %14 = vector.load %arg1[%13, %c0_9] : memref<50x128xf32, #tpu.memory_space<vmem>>, vector<1x128xf32>
    %c4 = arith.constant 4 : index
    %15 = memref.load %arg0[%c4] : memref<8xi32, #tpu.memory_space<smem>>
    %16 = arith.index_cast %15 : i32 to index
    %c0_10 = arith.constant 0 : index
    %17 = vector.load %arg1[%16, %c0_10] : memref<50x128xf32, #tpu.memory_space<vmem>>, vector<1x128xf32>
    %c5 = arith.constant 5 : index
    %18 = memref.load %arg0[%c5] : memref<8xi32, #tpu.memory_space<smem>>
    %19 = arith.index_cast %18 : i32 to index
    %c0_11 = arith.constant 0 : index
    %20 = vector.load %arg1[%19, %c0_11] : memref<50x128xf32, #tpu.memory_space<vmem>>, vector<1x128xf32>
    %c6 = arith.constant 6 : index
    %21 = memref.load %arg0[%c6] : memref<8xi32, #tpu.memory_space<smem>>
    %22 = arith.index_cast %21 : i32 to index
    %c0_12 = arith.constant 0 : index
    %23 = vector.load %arg1[%22, %c0_12] : memref<50x128xf32, #tpu.memory_space<vmem>>, vector<1x128xf32>
    %c7 = arith.constant 7 : index
    %24 = memref.load %arg0[%c7] : memref<8xi32, #tpu.memory_space<smem>>
    %25 = arith.index_cast %24 : i32 to index
    %c0_13 = arith.constant 0 : index
    %26 = vector.load %arg1[%25, %c0_13] : memref<50x128xf32, #tpu.memory_space<vmem>>, vector<1x128xf32>
    %cst = arith.constant 0.000000e+00 : f32
    %27 = vector.broadcast %cst : f32 to vector<1x32xf32>
    %cst_14 = arith.constant 0.000000e+00 : f32
    %28 = vector.broadcast %cst_14 : f32 to vector<1x32xf32>
    %29 = arith.truncf %27 : vector<1x32xf32> to vector<1x32xbf16>
    %cst_15 = arith.constant dense<0.000000e+00> : vector<1x128xf32>
    %30 = tpu.matmul %29, %0, %cst_15 {dimension_numbers = #tpu.dot_dimension_numbers<[1], [0], [0], [1], [0, 0, 1, 1], [], []>} : vector<1x32xbf16>, vector<32x128xbf16>, vector<1x128xf32> -> vector<1x128xf32>
    %31 = arith.addf %5, %30 : vector<1x128xf32>
    %32 = arith.negf %31 : vector<1x128xf32>
    %33 = math.exp %32 : vector<1x128xf32>
    %cst_16 = arith.constant 1.000000e+00 : f32
    %34 = vector.broadcast %cst_16 : f32 to vector<1x128xf32>
    %35 = arith.addf %34, %33 : vector<1x128xf32>
    %36 = arith.divf %34, %35 : vector<1x128xf32>
    %37 = math.tanh %31 : vector<1x128xf32>
    %38 = vector.extract_strided_slice %36 {offsets = [0, 0], sizes = [1, 32], strides = [1, 1]} : vector<1x128xf32> to vector<1x32xf32>
    %39 = vector.extract_strided_slice %36 {offsets = [0, 32], sizes = [1, 32], strides = [1, 1]} : vector<1x128xf32> to vector<1x32xf32>
    %40 = vector.extract_strided_slice %37 {offsets = [0, 64], sizes = [1, 32], strides = [1, 1]} : vector<1x128xf32> to vector<1x32xf32>
    %41 = vector.extract_strided_slice %36 {offsets = [0, 96], sizes = [1, 32], strides = [1, 1]} : vector<1x128xf32> to vector<1x32xf32>
    %42 = arith.mulf %39, %28 : vector<1x32xf32>
    %43 = arith.mulf %38, %40 : vector<1x32xf32>
    %44 = arith.addf %42, %43 : vector<1x32xf32>
    %45 = math.tanh %44 : vector<1x32xf32>
    %46 = arith.mulf %41, %45 : vector<1x32xf32>
    %47 = arith.truncf %46 : vector<1x32xf32> to vector<1x32xbf16>
    %cst_17 = arith.constant dense<0.000000e+00> : vector<1x128xf32>
    %48 = tpu.matmul %47, %0, %cst_17 {dimension_numbers = #tpu.dot_dimension_numbers<[1], [0], [0], [1], [0, 0, 1, 1], [], []>} : vector<1x32xbf16>, vector<32x128xbf16>, vector<1x128xf32> -> vector<1x128xf32>
    %49 = arith.addf %8, %48 : vector<1x128xf32>
    %50 = arith.negf %49 : vector<1x128xf32>
    %51 = math.exp %50 : vector<1x128xf32>
    %cst_18 = arith.constant 1.000000e+00 : f32
    %52 = vector.broadcast %cst_18 : f32 to vector<1x128xf32>
    %53 = arith.addf %52, %51 : vector<1x128xf32>
    %54 = arith.divf %52, %53 : vector<1x128xf32>
    %55 = math.tanh %49 : vector<1x128xf32>
    %56 = vector.extract_strided_slice %54 {offsets = [0, 0], sizes = [1, 32], strides = [1, 1]} : vector<1x128xf32> to vector<1x32xf32>
    %57 = vector.extract_strided_slice %54 {offsets = [0, 32], sizes = [1, 32], strides = [1, 1]} : vector<1x128xf32> to vector<1x32xf32>
    %58 = vector.extract_strided_slice %55 {offsets = [0, 64], sizes = [1, 32], strides = [1, 1]} : vector<1x128xf32> to vector<1x32xf32>
    %59 = vector.extract_strided_slice %54 {offsets = [0, 96], sizes = [1, 32], strides = [1, 1]} : vector<1x128xf32> to vector<1x32xf32>
    %60 = arith.mulf %57, %44 : vector<1x32xf32>
    %61 = arith.mulf %56, %58 : vector<1x32xf32>
    %62 = arith.addf %60, %61 : vector<1x32xf32>
    %63 = math.tanh %62 : vector<1x32xf32>
    %64 = arith.mulf %59, %63 : vector<1x32xf32>
    %65 = arith.truncf %64 : vector<1x32xf32> to vector<1x32xbf16>
    %cst_19 = arith.constant dense<0.000000e+00> : vector<1x128xf32>
    %66 = tpu.matmul %65, %0, %cst_19 {dimension_numbers = #tpu.dot_dimension_numbers<[1], [0], [0], [1], [0, 0, 1, 1], [], []>} : vector<1x32xbf16>, vector<32x128xbf16>, vector<1x128xf32> -> vector<1x128xf32>
    %67 = arith.addf %11, %66 : vector<1x128xf32>
    %68 = arith.negf %67 : vector<1x128xf32>
    %69 = math.exp %68 : vector<1x128xf32>
    %cst_20 = arith.constant 1.000000e+00 : f32
    %70 = vector.broadcast %cst_20 : f32 to vector<1x128xf32>
    %71 = arith.addf %70, %69 : vector<1x128xf32>
    %72 = arith.divf %70, %71 : vector<1x128xf32>
    %73 = math.tanh %67 : vector<1x128xf32>
    %74 = vector.extract_strided_slice %72 {offsets = [0, 0], sizes = [1, 32], strides = [1, 1]} : vector<1x128xf32> to vector<1x32xf32>
    %75 = vector.extract_strided_slice %72 {offsets = [0, 32], sizes = [1, 32], strides = [1, 1]} : vector<1x128xf32> to vector<1x32xf32>
    %76 = vector.extract_strided_slice %73 {offsets = [0, 64], sizes = [1, 32], strides = [1, 1]} : vector<1x128xf32> to vector<1x32xf32>
    %77 = vector.extract_strided_slice %72 {offsets = [0, 96], sizes = [1, 32], strides = [1, 1]} : vector<1x128xf32> to vector<1x32xf32>
    %78 = arith.mulf %75, %62 : vector<1x32xf32>
    %79 = arith.mulf %74, %76 : vector<1x32xf32>
    %80 = arith.addf %78, %79 : vector<1x32xf32>
    %81 = math.tanh %80 : vector<1x32xf32>
    %82 = arith.mulf %77, %81 : vector<1x32xf32>
    %83 = arith.truncf %82 : vector<1x32xf32> to vector<1x32xbf16>
    %cst_21 = arith.constant dense<0.000000e+00> : vector<1x128xf32>
    %84 = tpu.matmul %83, %0, %cst_21 {dimension_numbers = #tpu.dot_dimension_numbers<[1], [0], [0], [1], [0, 0, 1, 1], [], []>} : vector<1x32xbf16>, vector<32x128xbf16>, vector<1x128xf32> -> vector<1x128xf32>
    %85 = arith.addf %14, %84 : vector<1x128xf32>
    %86 = arith.negf %85 : vector<1x128xf32>
    %87 = math.exp %86 : vector<1x128xf32>
    %cst_22 = arith.constant 1.000000e+00 : f32
    %88 = vector.broadcast %cst_22 : f32 to vector<1x128xf32>
    %89 = arith.addf %88, %87 : vector<1x128xf32>
    %90 = arith.divf %88, %89 : vector<1x128xf32>
    %91 = math.tanh %85 : vector<1x128xf32>
    %92 = vector.extract_strided_slice %90 {offsets = [0, 0], sizes = [1, 32], strides = [1, 1]} : vector<1x128xf32> to vector<1x32xf32>
    %93 = vector.extract_strided_slice %90 {offsets = [0, 32], sizes = [1, 32], strides = [1, 1]} : vector<1x128xf32> to vector<1x32xf32>
    %94 = vector.extract_strided_slice %91 {offsets = [0, 64], sizes = [1, 32], strides = [1, 1]} : vector<1x128xf32> to vector<1x32xf32>
    %95 = vector.extract_strided_slice %90 {offsets = [0, 96], sizes = [1, 32], strides = [1, 1]} : vector<1x128xf32> to vector<1x32xf32>
    %96 = arith.mulf %93, %80 : vector<1x32xf32>
    %97 = arith.mulf %92, %94 : vector<1x32xf32>
    %98 = arith.addf %96, %97 : vector<1x32xf32>
    %99 = math.tanh %98 : vector<1x32xf32>
    %100 = arith.mulf %95, %99 : vector<1x32xf32>
    %101 = arith.truncf %100 : vector<1x32xf32> to vector<1x32xbf16>
    %cst_23 = arith.constant dense<0.000000e+00> : vector<1x128xf32>
    %102 = tpu.matmul %101, %0, %cst_23 {dimension_numbers = #tpu.dot_dimension_numbers<[1], [0], [0], [1], [0, 0, 1, 1], [], []>} : vector<1x32xbf16>, vector<32x128xbf16>, vector<1x128xf32> -> vector<1x128xf32>
    %103 = arith.addf %17, %102 : vector<1x128xf32>
    %104 = arith.negf %103 : vector<1x128xf32>
    %105 = math.exp %104 : vector<1x128xf32>
    %cst_24 = arith.constant 1.000000e+00 : f32
    %106 = vector.broadcast %cst_24 : f32 to vector<1x128xf32>
    %107 = arith.addf %106, %105 : vector<1x128xf32>
    %108 = arith.divf %106, %107 : vector<1x128xf32>
    %109 = math.tanh %103 : vector<1x128xf32>
    %110 = vector.extract_strided_slice %108 {offsets = [0, 0], sizes = [1, 32], strides = [1, 1]} : vector<1x128xf32> to vector<1x32xf32>
    %111 = vector.extract_strided_slice %108 {offsets = [0, 32], sizes = [1, 32], strides = [1, 1]} : vector<1x128xf32> to vector<1x32xf32>
    %112 = vector.extract_strided_slice %109 {offsets = [0, 64], sizes = [1, 32], strides = [1, 1]} : vector<1x128xf32> to vector<1x32xf32>
    %113 = vector.extract_strided_slice %108 {offsets = [0, 96], sizes = [1, 32], strides = [1, 1]} : vector<1x128xf32> to vector<1x32xf32>
    %114 = arith.mulf %111, %98 : vector<1x32xf32>
    %115 = arith.mulf %110, %112 : vector<1x32xf32>
    %116 = arith.addf %114, %115 : vector<1x32xf32>
    %117 = math.tanh %116 : vector<1x32xf32>
    %118 = arith.mulf %113, %117 : vector<1x32xf32>
    %119 = arith.truncf %118 : vector<1x32xf32> to vector<1x32xbf16>
    %cst_25 = arith.constant dense<0.000000e+00> : vector<1x128xf32>
    %120 = tpu.matmul %119, %0, %cst_25 {dimension_numbers = #tpu.dot_dimension_numbers<[1], [0], [0], [1], [0, 0, 1, 1], [], []>} : vector<1x32xbf16>, vector<32x128xbf16>, vector<1x128xf32> -> vector<1x128xf32>
    %121 = arith.addf %20, %120 : vector<1x128xf32>
    %122 = arith.negf %121 : vector<1x128xf32>
    %123 = math.exp %122 : vector<1x128xf32>
    %cst_26 = arith.constant 1.000000e+00 : f32
    %124 = vector.broadcast %cst_26 : f32 to vector<1x128xf32>
    %125 = arith.addf %124, %123 : vector<1x128xf32>
    %126 = arith.divf %124, %125 : vector<1x128xf32>
    %127 = math.tanh %121 : vector<1x128xf32>
    %128 = vector.extract_strided_slice %126 {offsets = [0, 0], sizes = [1, 32], strides = [1, 1]} : vector<1x128xf32> to vector<1x32xf32>
    %129 = vector.extract_strided_slice %126 {offsets = [0, 32], sizes = [1, 32], strides = [1, 1]} : vector<1x128xf32> to vector<1x32xf32>
    %130 = vector.extract_strided_slice %127 {offsets = [0, 64], sizes = [1, 32], strides = [1, 1]} : vector<1x128xf32> to vector<1x32xf32>
    %131 = vector.extract_strided_slice %126 {offsets = [0, 96], sizes = [1, 32], strides = [1, 1]} : vector<1x128xf32> to vector<1x32xf32>
    %132 = arith.mulf %129, %116 : vector<1x32xf32>
    %133 = arith.mulf %128, %130 : vector<1x32xf32>
    %134 = arith.addf %132, %133 : vector<1x32xf32>
    %135 = math.tanh %134 : vector<1x32xf32>
    %136 = arith.mulf %131, %135 : vector<1x32xf32>
    %137 = arith.truncf %136 : vector<1x32xf32> to vector<1x32xbf16>
    %cst_27 = arith.constant dense<0.000000e+00> : vector<1x128xf32>
    %138 = tpu.matmul %137, %0, %cst_27 {dimension_numbers = #tpu.dot_dimension_numbers<[1], [0], [0], [1], [0, 0, 1, 1], [], []>} : vector<1x32xbf16>, vector<32x128xbf16>, vector<1x128xf32> -> vector<1x128xf32>
    %139 = arith.addf %23, %138 : vector<1x128xf32>
    %140 = arith.negf %139 : vector<1x128xf32>
    %141 = math.exp %140 : vector<1x128xf32>
    %cst_28 = arith.constant 1.000000e+00 : f32
    %142 = vector.broadcast %cst_28 : f32 to vector<1x128xf32>
    %143 = arith.addf %142, %141 : vector<1x128xf32>
    %144 = arith.divf %142, %143 : vector<1x128xf32>
    %145 = math.tanh %139 : vector<1x128xf32>
    %146 = vector.extract_strided_slice %144 {offsets = [0, 0], sizes = [1, 32], strides = [1, 1]} : vector<1x128xf32> to vector<1x32xf32>
    %147 = vector.extract_strided_slice %144 {offsets = [0, 32], sizes = [1, 32], strides = [1, 1]} : vector<1x128xf32> to vector<1x32xf32>
    %148 = vector.extract_strided_slice %145 {offsets = [0, 64], sizes = [1, 32], strides = [1, 1]} : vector<1x128xf32> to vector<1x32xf32>
    %149 = vector.extract_strided_slice %144 {offsets = [0, 96], sizes = [1, 32], strides = [1, 1]} : vector<1x128xf32> to vector<1x32xf32>
    %150 = arith.mulf %147, %134 : vector<1x32xf32>
    %151 = arith.mulf %146, %148 : vector<1x32xf32>
    %152 = arith.addf %150, %151 : vector<1x32xf32>
    %153 = math.tanh %152 : vector<1x32xf32>
    %154 = arith.mulf %149, %153 : vector<1x32xf32>
    %155 = arith.truncf %154 : vector<1x32xf32> to vector<1x32xbf16>
    %cst_29 = arith.constant dense<0.000000e+00> : vector<1x128xf32>
    %156 = tpu.matmul %155, %0, %cst_29 {dimension_numbers = #tpu.dot_dimension_numbers<[1], [0], [0], [1], [0, 0, 1, 1], [], []>} : vector<1x32xbf16>, vector<32x128xbf16>, vector<1x128xf32> -> vector<1x128xf32>
    %157 = arith.addf %26, %156 : vector<1x128xf32>
    %158 = arith.negf %157 : vector<1x128xf32>
    %159 = math.exp %158 : vector<1x128xf32>
    %cst_30 = arith.constant 1.000000e+00 : f32
    %160 = vector.broadcast %cst_30 : f32 to vector<1x128xf32>
    %161 = arith.addf %160, %159 : vector<1x128xf32>
    %162 = arith.divf %160, %161 : vector<1x128xf32>
    %163 = math.tanh %157 : vector<1x128xf32>
    %164 = vector.extract_strided_slice %162 {offsets = [0, 0], sizes = [1, 32], strides = [1, 1]} : vector<1x128xf32> to vector<1x32xf32>
    %165 = vector.extract_strided_slice %162 {offsets = [0, 32], sizes = [1, 32], strides = [1, 1]} : vector<1x128xf32> to vector<1x32xf32>
    %166 = vector.extract_strided_slice %163 {offsets = [0, 64], sizes = [1, 32], strides = [1, 1]} : vector<1x128xf32> to vector<1x32xf32>
    %167 = vector.extract_strided_slice %162 {offsets = [0, 96], sizes = [1, 32], strides = [1, 1]} : vector<1x128xf32> to vector<1x32xf32>
    %168 = arith.mulf %165, %152 : vector<1x32xf32>
    %169 = arith.mulf %164, %166 : vector<1x32xf32>
    %170 = arith.addf %168, %169 : vector<1x32xf32>
    %171 = math.tanh %170 : vector<1x32xf32>
    %172 = arith.mulf %167, %171 : vector<1x32xf32>
    %cst_31 = arith.constant dense<0.000000e+00> : vector<1x16xf32>
    %173 = tpu.matmul %172, %1, %cst_31 {dimension_numbers = #tpu.dot_dimension_numbers<[1], [0], [0], [1], [0, 0, 1, 1], [], []>} : vector<1x32xf32>, vector<32x16xf32>, vector<1x16xf32> -> vector<1x16xf32>
    %174 = arith.addf %173, %2 : vector<1x16xf32>
    %c0_32 = arith.constant 0 : index
    %c0_33 = arith.constant 0 : index
    %175 = vector.load %arg5[%c0_32, %c0_33] : memref<1x16xf32, #tpu.memory_space<vmem>>, vector<1x16xf32>
    tpu.vector_store %arg5[%c0_32, %c0_33], %174 {strides = array<i32>} : memref<1x16xf32, #tpu.memory_space<vmem>>, vector<1x16xf32>,
    return
  }
}

</mosaic_0001>

<bundles_post_ra>
// kernel: tpu_custom_call.1
= control target key start
LH: loop header
LB: loop body
LE: loop exit
PB: predicated region body
PF: predicated region fallthrough
CT: control target
= control target key end

     0   :  { %10 = vsyncpa [#allocation5], 0  ;;  %s1225_s0 = inlined_call_operand.vmem [shape: s32[8], index: 0, kind: input, shape index: {}]   ;;  %s1226_s1 = inlined_call_operand.hbm [shape: f32[50,128], index: 1, kind: input, shape index: {}]   ;;  %s1227_s2 = inlined_call_operand.vmem [shape: bf16[32,128], index: 2, kind: input, shape index: {}]   ;;  %s1228_s3 = inlined_call_operand.vmem [shape: f32[32,16], index: 3, kind: input, shape index: {}]   ;;  %s1229_s4 = inlined_call_operand.vmem [shape: f32[1,16], index: 4, kind: input, shape index: {}]   ;;  %s1230_s5 = inlined_call_operand.hbm [shape: f32[1,16], index: 5, kind: output, shape index: {}]  }
   0x1   :  { %11 = vsyncpa [#allocation3], 0 }
   0x2   :  { %12 = vsyncpa [#allocation4], 0  ;;  %s19_s20 = sshll.u32 %s1225_s0, 4  ;;  %s20_s20 = int_to_ptr.vmem [resolvable:$true] %s19_s20 }
   0x3   :  { %s980_s21 = scalar_lea.vmem %s20_s20, 16  ;;  %p985_p1 = scmp.lt.s32.totalorder %s20_s20, %s20_s20 }
   0x4   :  { %p981_p0 = scmp.ne.s32.totalorder %s20_s20, %s980_s21  ;;  %p986_p2 = scmp.lt.s32.totalorder %s980_s21, %s980_s21 }
   0x6   :  { %p987_p3 = por %p986_p2, %p985_p1 }
   0x8   :  { %p988_p4 = pnand %p987_p3, %p981_p0 }
   0xa   :  { %991 = shalt.err (!%p988_p4)
}
   0xb   :  { %s1042_s22 = smov [#allocation2]   ;;  %s1043_s23 = smov [#allocation6]  }
   0xc   :  { %22 = dma.vmem_to_smem %s20_s20, 16, %s1042_s22, [#allocation5]  }
   0xd   :  { %s28_s24 = sshll.u32 %s1043_s23, 4  ;;  %s992_s27 = scalar_lea.hbm %s1226_s1, 896  ;;  %s29_s24 = int_to_ptr.vmem [resolvable:$true] %s28_s24 }
   0xe   :  { %p993_p5 = scmp.ne.s32.totalorder %s1226_s1, %s992_s27  ;;  %p996_p6 = scmp.lt.u32.totalorder %s992_s27, %s1226_s1 }
  0x10   :  { %p998_p7 = pnand %p996_p6, %p993_p5 }
  0x12   :  { %1001 = shalt.err (!%p998_p7)
}
  0x13   :  { %s1002_s6 = scalar_lea.vmem %s29_s24, 896  ;;  %p1007_p9 = scmp.lt.s32.totalorder %s29_s24, %s29_s24 }
  0x14   :  { %p1003_p8 = scmp.ne.s32.totalorder %s29_s24, %s1002_s6  ;;  %p1008_p10 = scmp.lt.s32.totalorder %s1002_s6, %s1002_s6 }
  0x16   :  { %p1009_p11 = por %p1008_p10, %p1007_p9 }
  0x18   :  { %p1010_p12 = pnand %p1009_p11, %p1003_p8 }
  0x1a   :  { %1013 = shalt.err (!%p1010_p12)
}
  0x1b   :  { %s1044_s7 = smov 128   ;;  %s1045_s8 = smov 8  }
  0x1c   :  { %34 = dma.hbm_to_vmem [thread:$0]  %s1226_s1, 896, %s29_s24, [#allocation3], %s1044_s7, %s1044_s7, %s1045_s8  }
  0x1d   :  { %1036 = dma.done.wait [#allocation5], 16  }
  0x1e   :  { %1037 = vsyncadd [#allocation5], 4294967280 }
  0x1f   :  { %1038 = dma.done.wait [#allocation3], 896  }
  0x20   :  { %1039 = vsyncadd [#allocation3], 4294966400 }
  0x21   :  { %47 = sfence }
  0x22   :  { %v1101_v0 = vld [vmem:[%s1227_s2] sm:$0xff]   ;;  %v1046_v1 = vmov 0.0   ;;  %v1109_v2 = vld [vmem:[%s1227_s2 + $0x8] sm:$0xff]   ;;  %vm1047_vm0 = vmmov 0   ;;  %v1048_v3 = vmov 0   ;;  %s58_s1 = sld [smem:[#allocation2]] }
  0x23   :  { %822 = vmatprep.subr.bf16.mxu0 %v1046_v1  ;;  %830 = vmatprep.subr.bf16.mxu1 %v1046_v1  ;;  %s1049_s15 = smov 64   ;;  %s1050_s16 = smov 32   ;;  %vm94_vm1 = vcmask 261120   ;;  %vm742_vm2 = vcmask 122880  }
  0x24   :  { %823 = vmatpush3.bf16.msra.mxu0 %v1101_v0  ;;  %826 = vmatprep.mubr.msk.bf16.mxu0 %vm1047_vm0, %v1046_v1  ;;  %s768_s17 = sld [smem:[#allocation2 + $0x1]]  ;;  %s769_s19 = sld [smem:[#allocation2 + $0x2]] }
  0x25   :  { %824 = vmatprep.subr.bf16.mxu0 %v1046_v1  ;;  %831 = vmatpush3.bf16.msra.mxu1 %v1101_v0  ;;  %s770_s21 = sld [smem:[#allocation2 + $0x3]]  ;;  %s771_s23 = sld [smem:[#allocation2 + $0x4]] }
  0x26   :  { %832 = vmatprep.subr.bf16.mxu1 %v1046_v1  ;;  %834 = vmatprep.mubr.msk.bf16.mxu1 %vm1047_vm0, %v1046_v1  ;;  %s772_s25 = sld [smem:[#allocation2 + $0x5]]  ;;  %s773_s27 = sld [smem:[#allocation2 + $0x6]] }
  0x27   :  { %s774_s29 = sld [smem:[#allocation2 + $0x7]] }
  0x28   :  { %825 = vmatpush3.bf16.msra.mxu0 %v1109_v2  ;;  %s59_s2 = scalar_lea.vmem [#allocation6], %s58_s1  ;;  %s1052_s1 = smov [#allocation7]  }
  0x29   :  { %833 = vmatpush3.bf16.msra.mxu1 %v1109_v2  ;;  %838 = vmatprep.subr.bf16.mxu0 %v1046_v1  ;;  %v60_v4 = vld [vmem:[%s59_s2] sm:$0x1] }
  0x2a   :  { %846 = vmatprep.subr.bf16.mxu1 %v1046_v1  ;;  %s62_s18 = scalar_lea.vmem [#allocation6], %s768_s17  ;;  %s65_s20 = scalar_lea.vmem [#allocation6], %s769_s19 }
  0x2b   :  { %827 = vmatmul.mubr.bf16.vlgmr.msra.gmra.mrb[0].mxu0 %v1048_v3  ;;  %v63_v25 = vld [vmem:[%s62_s18] sm:$0x1]  ;;  %s68_s22 = scalar_lea.vmem [#allocation6], %s770_s21  ;;  %s71_s24 = scalar_lea.vmem [#allocation6], %s771_s23 }
  0x2c   :  { %839 = vmatpush3.bf16.msra.mxu0 %v1101_v0  ;;  %842 = vmatprep.mubr.msk.bf16.mxu0 %vm1047_vm0, %v1046_v1  ;;  %v66_v46 = vld [vmem:[%s65_s20] sm:$0x1]  ;;  %s74_s26 = scalar_lea.vmem [#allocation6], %s772_s25  ;;  %s77_s28 = scalar_lea.vmem [#allocation6], %s773_s27 }
  0x2d   :  { %840 = vmatprep.subr.bf16.mxu0 %v1046_v1  ;;  %s80_s0 = scalar_lea.vmem [#allocation6], %s774_s29 }
  0x30   :  { %841 = vmatpush3.bf16.msra.mxu0 %v1109_v2 }
  0x31   :  { %854 = vmatprep.subr.bf16.mxu0 %v1046_v1 }
  0xfe   :  { %v132_v5 = vpop.f32.mrb[0].mxu0 }
  0xff   :  { %v138_v6 = vadd.f32 %v132_v5, %v60_v4  ;;  %v828_v7 = vpop.f32.mrb[1].mxu0 }
 0x100   :  { %v135_v8 = vpop.f32.mrb[2].mxu0 }
 0x101   :  { %916 = vtanh.f32 %v138_v6  ;;  %v829_v9 = vpop.f32.mrb[3].mxu0  ;;  %v777_v11 = vmul.f32 -1.442695, %v138_v6  ;;  %v69_v6 = vld [vmem:[%s68_s22] sm:$0x1] }
 0x103   :  { %918 = vpow2.f32 %v777_v11 }
 0x10b   :  { %v917_v10 = vpop.eup %916 }
 0x10c   :  { %148 = vrot.lane.b32.xlu0 %v917_v10, %s1049_s15 }
 0x10d   :  { %v919_v12 = vpop.eup %918 }
 0x10e   :  { %v142_v13 = vadd.f32 1.0, %v919_v12 }
 0x110   :  { %920 = vrcp.f32 %v142_v13 }
 0x11a   :  { %v921_v14 = vpop.eup %920 }
 0x11b   :  { %v146_v17 = vmul.f32 0.0, %v921_v14 }
 0x17e   :  { %v149_v15 = vpop.permute.xlu0 %148 }
 0x17f   :  { %v151_v16 = vmul.f32 %v921_v14, %v149_v15 }
 0x181   :  { %153 = vrot.lane.b32.xlu0 %v151_v16, %s1050_s16 }
 0x1f3   :  { %v154_v18 = vpop.permute.xlu0 %153 }
 0x1f4   :  { %v156_v19 = vadd.f32 %v154_v18, %v146_v17 }
 0x1f6   :  { %922 = vtanh.f32 %v156_v19 }
 0x200   :  { %v923_v20 = vpop.eup %922 }
 0x201   :  { %159 = vrot.lane.b32.xlu1 %v923_v20, %s1049_s15 }
 0x273   :  { %v160_v21 = vpop.permute.xlu1 %159 }
 0x274   :  { %v162_v22 = vmul.f32 %v921_v14, %v160_v21 }
 0x276   :  { %v163_v23 = vpack.c.bf16 %v162_v22, %v162_v22 }
 0x278   :  { %165 = vrot.lane.b32.xlu1 %v163_v23, %s1050_s16 }
 0x2ea   :  { %v166_v24 = vpop.permute.xlu1 %165 }
 0x2eb   :  { %835 = vmatmul.mubr.msk.bf16.vlgmr.msra.gmra.mrb[0].mxu1 %vm94_vm1, %v166_v24 }
 0x2ec   :  { %847 = vmatpush3.bf16.msra.mxu1 %v1101_v0  ;;  %850 = vmatprep.mubr.msk.bf16.mxu1 %vm1047_vm0, %v1046_v1 }
 0x2ed   :  { %848 = vmatprep.subr.bf16.mxu1 %v1046_v1 }
 0x2f0   :  { %849 = vmatpush3.bf16.msra.mxu1 %v1109_v2 }
 0x2f1   :  { %862 = vmatprep.subr.bf16.mxu1 %v1046_v1 }
 0x3be   :  { %v204_v26 = vpop.f32.mrb[0].mxu1 }
 0x3bf   :  { %v210_v27 = vadd.f32 %v204_v26, %v63_v25  ;;  %v836_v28 = vpop.f32.mrb[1].mxu1 }
 0x3c0   :  { %v207_v29 = vpop.f32.mrb[2].mxu1 }
 0x3c1   :  { %924 = vtanh.f32 %v210_v27  ;;  %v837_v30 = vpop.f32.mrb[3].mxu1  ;;  %v779_v32 = vmul.f32 -1.442695, %v210_v27  ;;  %v72_v27 = vld [vmem:[%s71_s24] sm:$0x1] }
 0x3c3   :  { %926 = vpow2.f32 %v779_v32 }
 0x3cb   :  { %v925_v31 = vpop.eup %924 }
 0x3cc   :  { %220 = vrot.lane.b32.xlu0 %v925_v31, %s1049_s15 }
 0x3cd   :  { %v927_v33 = vpop.eup %926 }
 0x3ce   :  { %v214_v34 = vadd.f32 1.0, %v927_v33 }
 0x3d0   :  { %928 = vrcp.f32 %v214_v34 }
 0x3da   :  { %v929_v35 = vpop.eup %928 }
 0x3db   :  { %v218_v38 = vmul.f32 %v929_v35, %v156_v19 }
 0x43e   :  { %v221_v36 = vpop.permute.xlu0 %220 }
 0x43f   :  { %v223_v37 = vmul.f32 %v929_v35, %v221_v36 }
 0x441   :  { %225 = vrot.lane.b32.xlu1 %v223_v37, %s1050_s16 }
 0x4b3   :  { %v226_v39 = vpop.permute.xlu1 %225 }
 0x4b4   :  { %v228_v40 = vadd.f32 %v226_v39, %v218_v38 }
 0x4b6   :  { %930 = vtanh.f32 %v228_v40 }
 0x4c0   :  { %v931_v41 = vpop.eup %930 }
 0x4c1   :  { %231 = vrot.lane.b32.xlu0 %v931_v41, %s1049_s15 }
 0x533   :  { %v232_v42 = vpop.permute.xlu0 %231 }
 0x534   :  { %v234_v43 = vmul.f32 %v929_v35, %v232_v42 }
 0x536   :  { %v235_v44 = vpack.c.bf16 %v234_v43, %v234_v43 }
 0x538   :  { %237 = vrot.lane.b32.xlu1 %v235_v44, %s1050_s16 }
 0x5aa   :  { %v238_v45 = vpop.permute.xlu1 %237 }
 0x5ab   :  { %843 = vmatmul.mubr.msk.bf16.vlgmr.msra.gmra.mrb[4].mxu0 %vm94_vm1, %v238_v45 }
 0x5ac   :  { %855 = vmatpush3.bf16.msra.mxu0 %v1101_v0  ;;  %858 = vmatprep.mubr.msk.bf16.mxu0 %vm1047_vm0, %v1046_v1 }
 0x5ad   :  { %856 = vmatprep.subr.bf16.mxu0 %v1046_v1 }
 0x5b0   :  { %857 = vmatpush3.bf16.msra.mxu0 %v1109_v2 }
 0x5b1   :  { %870 = vmatprep.subr.bf16.mxu0 %v1046_v1 }
 0x67e   :  { %v276_v47 = vpop.f32.mrb[4].mxu0 }
 0x67f   :  { %v282_v48 = vadd.f32 %v276_v47, %v66_v46  ;;  %v844_v49 = vpop.f32.mrb[5].mxu0 }
 0x680   :  { %v279_v50 = vpop.f32.mrb[6].mxu0 }
 0x681   :  { %932 = vtanh.f32 %v282_v48  ;;  %v845_v51 = vpop.f32.mrb[7].mxu0  ;;  %v781_v53 = vmul.f32 -1.442695, %v282_v48  ;;  %v75_v48 = vld [vmem:[%s74_s26] sm:$0x1] }
 0x683   :  { %934 = vpow2.f32 %v781_v53 }
 0x68b   :  { %v933_v52 = vpop.eup %932 }
 0x68c   :  { %292 = vrot.lane.b32.xlu0 %v933_v52, %s1049_s15 }
 0x68d   :  { %v935_v54 = vpop.eup %934 }
 0x68e   :  { %v286_v55 = vadd.f32 1.0, %v935_v54 }
 0x690   :  { %936 = vrcp.f32 %v286_v55 }
 0x69a   :  { %v937_v56 = vpop.eup %936 }
 0x69b   :  { %v290_v59 = vmul.f32 %v937_v56, %v228_v40 }
 0x6fe   :  { %v293_v57 = vpop.permute.xlu0 %292 }
 0x6ff   :  { %v295_v58 = vmul.f32 %v937_v56, %v293_v57 }
 0x701   :  { %297 = vrot.lane.b32.xlu1 %v295_v58, %s1050_s16 }
 0x773   :  { %v298_v60 = vpop.permute.xlu1 %297 }
 0x774   :  { %v300_v61 = vadd.f32 %v298_v60, %v290_v59 }
 0x776   :  { %938 = vtanh.f32 %v300_v61 }
 0x780   :  { %v939_v62 = vpop.eup %938 }
 0x781   :  { %303 = vrot.lane.b32.xlu0 %v939_v62, %s1049_s15 }
 0x7f3   :  { %v304_v63 = vpop.permute.xlu0 %303 }
 0x7f4   :  { %v306_v3 = vmul.f32 %v937_v56, %v304_v63 }
 0x7f6   :  { %v307_v4 = vpack.c.bf16 %v306_v3, %v306_v3 }
 0x7f8   :  { %309 = vrot.lane.b32.xlu1 %v307_v4, %s1050_s16 }
 0x86a   :  { %v310_v5 = vpop.permute.xlu1 %309 }
 0x86b   :  { %851 = vmatmul.mubr.msk.bf16.vlgmr.msra.gmra.mrb[4].mxu1 %vm94_vm1, %v310_v5 }
 0x86c   :  { %863 = vmatpush3.bf16.msra.mxu1 %v1101_v0  ;;  %866 = vmatprep.mubr.msk.bf16.mxu1 %vm1047_vm0, %v1046_v1 }
 0x86d   :  { %864 = vmatprep.subr.bf16.mxu1 %v1046_v1 }
 0x870   :  { %865 = vmatpush3.bf16.msra.mxu1 %v1109_v2 }
 0x871   :  { %878 = vmatprep.subr.bf16.mxu1 %v1046_v1 }
 0x93e   :  { %v348_v7 = vpop.f32.mrb[4].mxu1 }
 0x93f   :  { %v354_v8 = vadd.f32 %v348_v7, %v69_v6  ;;  %v852_v9 = vpop.f32.mrb[5].mxu1  ;;  %v78_v6 = vld [vmem:[%s77_s28] sm:$0x1] }
 0x940   :  { %v351_v10 = vpop.f32.mrb[6].mxu1 }
 0x941   :  { %940 = vtanh.f32 %v354_v8  ;;  %v853_v11 = vpop.f32.mrb[7].mxu1  ;;  %v783_v13 = vmul.f32 -1.442695, %v354_v8 }
 0x943   :  { %942 = vpow2.f32 %v783_v13 }
 0x94b   :  { %v941_v12 = vpop.eup %940 }
 0x94c   :  { %364 = vrot.lane.b32.xlu0 %v941_v12, %s1049_s15 }
 0x94d   :  { %v943_v14 = vpop.eup %942 }
 0x94e   :  { %v358_v15 = vadd.f32 1.0, %v943_v14 }
 0x950   :  { %944 = vrcp.f32 %v358_v15 }
 0x95a   :  { %v945_v16 = vpop.eup %944 }
 0x95b   :  { %v362_v19 = vmul.f32 %v945_v16, %v300_v61 }
 0x9be   :  { %v365_v17 = vpop.permute.xlu0 %364 }
 0x9bf   :  { %v367_v18 = vmul.f32 %v945_v16, %v365_v17 }
 0x9c1   :  { %369 = vrot.lane.b32.xlu1 %v367_v18, %s1050_s16 }
 0xa33   :  { %v370_v20 = vpop.permute.xlu1 %369 }
 0xa34   :  { %v372_v21 = vadd.f32 %v370_v20, %v362_v19 }
 0xa36   :  { %946 = vtanh.f32 %v372_v21 }
 0xa40   :  { %v947_v22 = vpop.eup %946 }
 0xa41   :  { %375 = vrot.lane.b32.xlu0 %v947_v22, %s1049_s15 }
 0xab3   :  { %v376_v23 = vpop.permute.xlu0 %375 }
 0xab4   :  { %v378_v24 = vmul.f32 %v945_v16, %v376_v23 }
 0xab6   :  { %v379_v25 = vpack.c.bf16 %v378_v24, %v378_v24 }
 0xab8   :  { %381 = vrot.lane.b32.xlu1 %v379_v25, %s1050_s16 }
 0xb2a   :  { %v382_v26 = vpop.permute.xlu1 %381 }
 0xb2b   :  { %859 = vmatmul.mubr.msk.bf16.vlgmr.msra.gmra.mrb[8].mxu0 %vm94_vm1, %v382_v26  ;;  %v81_v26 = vld [vmem:[%s80_s0] sm:$0x1] }
 0xb2c   :  { %871 = vmatpush3.bf16.msra.mxu0 %v1101_v0  ;;  %874 = vmatprep.mubr.msk.bf16.mxu0 %vm1047_vm0, %v1046_v1 }
 0xb2d   :  { %872 = vmatprep.subr.bf16.mxu0 %v1046_v1 }
 0xb30   :  { %873 = vmatpush3.bf16.msra.mxu0 %v1109_v2 }
 0xbfe   :  { %v420_v28 = vpop.f32.mrb[8].mxu0 }
 0xbff   :  { %v426_v29 = vadd.f32 %v420_v28, %v72_v27  ;;  %v860_v30 = vpop.f32.mrb[9].mxu0 }
 0xc00   :  { %v423_v31 = vpop.f32.mrb[10].mxu0 }
 0xc01   :  { %948 = vtanh.f32 %v426_v29  ;;  %v861_v32 = vpop.f32.mrb[11].mxu0  ;;  %v785_v34 = vmul.f32 -1.442695, %v426_v29 }
 0xc03   :  { %950 = vpow2.f32 %v785_v34 }
 0xc0b   :  { %v949_v33 = vpop.eup %948 }
 0xc0c   :  { %436 = vrot.lane.b32.xlu0 %v949_v33, %s1049_s15 }
 0xc0d   :  { %v951_v35 = vpop.eup %950 }
 0xc0e   :  { %v430_v36 = vadd.f32 1.0, %v951_v35 }
 0xc10   :  { %952 = vrcp.f32 %v430_v36 }
 0xc1a   :  { %v953_v37 = vpop.eup %952 }
 0xc1b   :  { %v434_v40 = vmul.f32 %v953_v37, %v372_v21 }
 0xc7e   :  { %v437_v38 = vpop.permute.xlu0 %436 }
 0xc7f   :  { %v439_v39 = vmul.f32 %v953_v37, %v437_v38 }
 0xc81   :  { %441 = vrot.lane.b32.xlu1 %v439_v39, %s1050_s16 }
 0xcf3   :  { %v442_v41 = vpop.permute.xlu1 %441 }
 0xcf4   :  { %v444_v42 = vadd.f32 %v442_v41, %v434_v40 }
 0xcf6   :  { %954 = vtanh.f32 %v444_v42 }
 0xd00   :  { %v955_v43 = vpop.eup %954 }
 0xd01   :  { %447 = vrot.lane.b32.xlu0 %v955_v43, %s1049_s15  ;;  %v54_v43 = vld [vmem:[%s1228_s3 + $0x8] sm:$0xff] }
 0xd73   :  { %v448_v44 = vpop.permute.xlu0 %447 }
 0xd74   :  { %v450_v45 = vmul.f32 %v953_v37, %v448_v44  ;;  %v55_v44 = vld [vmem:[%s1228_s3 + $0x10] sm:$0xff] }
 0xd76   :  { %v451_v46 = vpack.c.bf16 %v450_v45, %v450_v45  ;;  %v1051_v45 = vmov 0.0|0.0  }
 0xd77   :  { %897 = vmatprep.subr.bf16.mxu0 %v1051_v45 }
 0xd78   :  { %453 = vrot.lane.b32.xlu1 %v451_v46, %s1050_s16 }
 0xdea   :  { %v454_v47 = vpop.permute.xlu1 %453 }
 0xdeb   :  { %867 = vmatmul.mubr.msk.bf16.vlgmr.msra.gmra.mrb[8].mxu1 %vm94_vm1, %v454_v47  ;;  %v56_v47 = vld [vmem:[%s1228_s3 + $0x18] sm:$0xff] }
 0xdec   :  { %879 = vmatpush3.bf16.msra.mxu1 %v1101_v0  ;;  %882 = vmatprep.mubr.msk.bf16.mxu1 %vm1047_vm0, %v1046_v1 }
 0xded   :  { %880 = vmatprep.subr.bf16.mxu1 %v1046_v1 }
 0xdf0   :  { %881 = vmatpush3.bf16.msra.mxu1 %v1109_v2 }
 0xebe   :  { %v492_v49 = vpop.f32.mrb[8].mxu1 }
 0xebf   :  { %v498_v50 = vadd.f32 %v492_v49, %v75_v48  ;;  %v868_v51 = vpop.f32.mrb[9].mxu1  ;;  %v901_v48 = vpack.c.bf16 %v56_v47, %v55_v44 }
 0xec0   :  { %v495_v52 = vpop.f32.mrb[10].mxu1 }
 0xec1   :  { %956 = vtanh.f32 %v498_v50  ;;  %v869_v53 = vpop.f32.mrb[11].mxu1  ;;  %v787_v0 = vmul.f32 -1.442695, %v498_v50 }
 0xec2   :  { %v57_v53 = vld [vmem:[%s1229_s4] sm:$0x1] }
 0xec3   :  { %958 = vpow2.f32 %v787_v0 }
 0xecb   :  { %v957_v54 = vpop.eup %956 }
 0xecc   :  { %508 = vrot.lane.b32.xlu0 %v957_v54, %s1049_s15 }
 0xecd   :  { %v959_v55 = vpop.eup %958 }
 0xece   :  { %v502_v56 = vadd.f32 1.0, %v959_v55 }
 0xed0   :  { %960 = vrcp.f32 %v502_v56 }
 0xeda   :  { %v961_v57 = vpop.eup %960 }
 0xedb   :  { %v506_v59 = vmul.f32 %v961_v57, %v444_v42  ;;  %v53_v42 = vld [vmem:[%s1228_s3] sm:$0xff]  ;;  %s750_s3 = sshll.u32 %s1052_s1, 4  ;;  %s751_s3 = int_to_ptr.vmem [resolvable:$true] %s750_s3 }
 0xedc   :  { %v898_v46 = vpack.c.bf16 %v54_v43, %v53_v42  ;;  %s1014_s2 = scalar_lea.vmem %s751_s3, 16  ;;  %p1019_p0 = scmp.lt.s32.totalorder %s751_s3, %s751_s3 }
 0xedd   :  { %p1015_p13 = scmp.ne.s32.totalorder %s751_s3, %s1014_s2 }
 0xf3e   :  { %v509_v58 = vpop.permute.xlu0 %508 }
 0xf3f   :  { %v511_v2 = vmul.f32 %v961_v57, %v509_v58 }
 0xf41   :  { %513 = vrot.lane.b32.xlu1 %v511_v2, %s1050_s16 }
 0xfb3   :  { %v514_v60 = vpop.permute.xlu1 %513 }
 0xfb4   :  { %v516_v61 = vadd.f32 %v514_v60, %v506_v59 }
 0xfb6   :  { %962 = vtanh.f32 %v516_v61 }
 0xfc0   :  { %v963_v62 = vpop.eup %962 }
 0xfc1   :  { %519 = vrot.lane.b32.xlu0 %v963_v62, %s1049_s15 }
0x1033   :  { %v520_v63 = vpop.permute.xlu0 %519 }
0x1034   :  { %v522_v3 = vmul.f32 %v961_v57, %v520_v63 }
0x1036   :  { %v523_v4 = vpack.c.bf16 %v522_v3, %v522_v3 }
0x1038   :  { %525 = vrot.lane.b32.xlu1 %v523_v4, %s1050_s16 }
0x10aa   :  { %v526_v5 = vpop.permute.xlu1 %525 }
0x10ab   :  { %875 = vmatmul.mubr.msk.bf16.vlgmr.msra.gmra.mrb[12].mxu0 %vm94_vm1, %v526_v5 }
0x10ac   :  { %894 = vmatprep.mubr.msk.f32.mxu0 %vm1047_vm0, %v1046_v1  ;;  %899 = vmatpush3.bf16.msra.mxu0 %v898_v46 }
0x10ad   :  { %900 = vmatprep.subr.bf16.mxu0 %v1051_v45 }
0x10b0   :  { %902 = vmatpush3.bf16.msra.mxu0 %v901_v48 }
0x117e   :  { %v564_v7 = vpop.f32.mrb[12].mxu0 }
0x117f   :  { %v570_v8 = vadd.f32 %v564_v7, %v78_v6  ;;  %v876_v9 = vpop.f32.mrb[13].mxu0 }
0x1180   :  { %v567_v10 = vpop.f32.mrb[14].mxu0 }
0x1181   :  { %964 = vtanh.f32 %v570_v8  ;;  %v877_v11 = vpop.f32.mrb[15].mxu0  ;;  %v789_v13 = vmul.f32 -1.442695, %v570_v8 }
0x1183   :  { %966 = vpow2.f32 %v789_v13 }
0x118b   :  { %v965_v12 = vpop.eup %964 }
0x118c   :  { %580 = vrot.lane.b32.xlu0 %v965_v12, %s1049_s15 }
0x118d   :  { %v967_v14 = vpop.eup %966 }
0x118e   :  { %v574_v15 = vadd.f32 1.0, %v967_v14 }
0x1190   :  { %968 = vrcp.f32 %v574_v15 }
0x119a   :  { %v969_v16 = vpop.eup %968 }
0x119b   :  { %v578_v18 = vmul.f32 %v969_v16, %v516_v61 }
0x11fe   :  { %v581_v17 = vpop.permute.xlu0 %580 }
0x11ff   :  { %v583_v1 = vmul.f32 %v969_v16, %v581_v17 }
0x1201   :  { %585 = vrot.lane.b32.xlu1 %v583_v1, %s1050_s16 }
0x1273   :  { %v586_v19 = vpop.permute.xlu1 %585 }
0x1274   :  { %v588_v20 = vadd.f32 %v586_v19, %v578_v18 }
0x1276   :  { %970 = vtanh.f32 %v588_v20 }
0x1280   :  { %v971_v21 = vpop.eup %970 }
0x1281   :  { %591 = vrot.lane.b32.xlu0 %v971_v21, %s1049_s15 }
0x12f3   :  { %v592_v22 = vpop.permute.xlu0 %591 }
0x12f4   :  { %v594_v23 = vmul.f32 %v969_v16, %v592_v22 }
0x12f6   :  { %v595_v24 = vpack.c.bf16 %v594_v23, %v594_v23 }
0x12f8   :  { %597 = vrot.lane.b32.xlu1 %v595_v24, %s1050_s16 }
0x136a   :  { %v598_v25 = vpop.permute.xlu1 %597 }
0x136b   :  { %883 = vmatmul.mubr.msk.bf16.vlgmr.msra.gmra.mrb[12].mxu1 %vm94_vm1, %v598_v25 }
0x143e   :  { %v636_v27 = vpop.f32.mrb[12].mxu1 }
0x143f   :  { %v642_v28 = vadd.f32 %v636_v27, %v81_v26  ;;  %v884_v29 = vpop.f32.mrb[13].mxu1 }
0x1440   :  { %v639_v30 = vpop.f32.mrb[14].mxu1 }
0x1441   :  { %972 = vtanh.f32 %v642_v28  ;;  %v885_v31 = vpop.f32.mrb[15].mxu1  ;;  %v791_v33 = vmul.f32 -1.442695, %v642_v28 }
0x1443   :  { %974 = vpow2.f32 %v791_v33 }
0x144b   :  { %v973_v32 = vpop.eup %972 }
0x144c   :  { %652 = vrot.lane.b32.xlu0 %v973_v32, %s1049_s15 }
0x144d   :  { %v975_v34 = vpop.eup %974 }
0x144e   :  { %v646_v35 = vadd.f32 1.0, %v975_v34 }
0x1450   :  { %976 = vrcp.f32 %v646_v35 }
0x145a   :  { %v977_v36 = vpop.eup %976 }
0x145b   :  { %v650_v39 = vmul.f32 %v977_v36, %v588_v20 }
0x14be   :  { %v653_v37 = vpop.permute.xlu0 %652 }
0x14bf   :  { %v655_v38 = vmul.f32 %v977_v36, %v653_v37 }
0x14c1   :  { %657 = vrot.lane.b32.xlu1 %v655_v38, %s1050_s16 }
0x1533   :  { %v658_v40 = vpop.permute.xlu1 %657 }
0x1534   :  { %v660_v41 = vadd.f32 %v658_v40, %v650_v39 }
0x1536   :  { %978 = vtanh.f32 %v660_v41 }
0x1540   :  { %v979_v49 = vpop.eup %978 }
0x1541   :  { %663 = vrot.lane.b32.xlu0 %v979_v49, %s1049_s15  ;;  %s1018_s15 = scalar_lea.vmem %s751_s3, 32 }
0x1542   :  { %p1020_p1 = scmp.lt.s32.totalorder %s1018_s15, %s1014_s2 }
0x1544   :  { %p1021_p2 = por %p1020_p1, %p1019_p0 }
0x1546   :  { %p1022_p3 = pnand %p1021_p2, %p1015_p13 }
0x15b3   :  { %v664_v50 = vpop.permute.xlu0 %663 }
0x15b4   :  { %v666_v51 = vmul.f32 %v977_v36, %v664_v50 }
0x15b6   :  { %668 = vrot.lane.b32.xlu1 %v666_v51, %s1050_s16 }
0x1628   :  { %v669_v52 = vpop.permute.xlu1 %668 }
0x1629   :  { %895 = vmatmul.mubr.msk.f32.vlgmr.msra.gmra.mrb[16].mxu0 %vm94_vm1, %v669_v52 }
0x16fc   :  { %v738_v54 = vpop.f32.mrb[16].mxu0 }
0x16fd   :  { %v739_v0 = vadd.f32 %v738_v54, %v57_v53  ;;  %v896_v55 = vpop.f32.mrb[17].mxu0 }
0x16ff   :  { %743 = vst.msk [vmem:[#allocation7] sm:$0x1] %vm742_vm2, %v739_v0 }
0x1700   :  { %1025 = shalt.err (!%p1022_p3)
}
0x1701   :  { %s1026_s4 = scalar_lea.hbm %s1230_s5, 16 }
0x1702   :  { %p1027_p4 = scmp.ne.s32.totalorder %s1230_s5, %s1026_s4  ;;  %p1030_p5 = scmp.lt.u32.totalorder %s1026_s4, %s1230_s5 }
0x1704   :  { %p1032_p6 = pnand %p1030_p5, %p1027_p4 }
0x1706   :  { %1035 = shalt.err (!%p1032_p6)
}
0x1707   :  { %753 = dma.vmem_to_hbm [thread:$0]  %s751_s3, 16, %s1230_s5, [#allocation4]  }
0x1708   :  { %1040 = dma.done.wait [#allocation4], 16  }
0x1709   :  { %1041 = vsyncadd [#allocation4], 4294967280 }
0x170a   :  { %757 = vsyncpa [#allocation3], 1 }
0x170b   :  { %758 = vsyncpa [#allocation4], 1 }
0x170c   :  { %759 = vsyncpa [#allocation5], 1 }

</bundles_post_ra>
